<compile_context>
chip_gen: v5e
topology: v5e:2x2
jax: 0.10.0
libtpu: 0.0.40
codegen_flags: <defaults>
</compile_context>

<pallas_src>
import functools

import jax
import jax.numpy as jnp
import numpy as np
from jax.experimental import pallas as pl
from jax.experimental.pallas import tpu as pltpu

MIN_STD = 1e-6
MIN_LOG_STD = float(np.log(MIN_STD))
INIT_STD = 1.0

LANE = 128          # TPU lane width (last dim)
SUBLANE = 8         # TPU sublane width (second-to-last dim, f32)
MAX_BATCH_TILE = 1024


def _round_up(x, m):
    return ((x + m - 1) // m) * m


def _mlp_kernel(x_ref, w1_ref, b1_ref, w2_ref, b2_ref, wmu_ref, bmu_ref,
                mu_ref):
    # hidden layer 1: linear + relu (f32 MXU accumulate)
    h = jnp.dot(x_ref[...], w1_ref[...], preferred_element_type=jnp.float32)
    h = jnp.maximum(h + b1_ref[...], 0.0)
    # hidden layer 2: linear + relu
    h = jnp.dot(h, w2_ref[...], preferred_element_type=jnp.float32)
    h = jnp.maximum(h + b2_ref[...], 0.0)
    # mu head (output last dim is unpadded; full-extent block, masked store)
    mu = jnp.dot(h, wmu_ref[...], preferred_element_type=jnp.float32)
    mu_ref[...] = mu + bmu_ref[...]


def prepare_kernel_params(params):
    """One-time conversion of torch-layout params into kernel layout.

    Torch F.linear uses weight (out, in) and computes x @ W.T + b; we
    transpose to (in, out).  Hidden dims are zero-padded to 128 so the
    intermediate activations are lane-dense, but the x feature (K of W1) and
    the mu output (N of Wmu) dims stay UNPADDED so the kernel streams no
    wasted HBM bytes.  Call once per parameter set, not per forward.
    """
    def to_in_out(w_torch_layout):
        return jnp.asarray(w_torch_layout, jnp.float32).T      # (in, out)

    w1 = to_in_out(params["layer1_w"])                          # (in, h1)
    w2 = to_in_out(params["layer2_w"])                          # (h1, h2)
    wmu = to_in_out(params["mu_w"])                             # (h2, out)

    in_size, h1 = w1.shape
    h2 = w2.shape[1]
    out_size = wmu.shape[1]
    h1_pad = _round_up(h1, LANE)
    h2_pad = _round_up(h2, LANE)

    def pad_b(b, n_pad):
        b = jnp.asarray(b, jnp.float32).reshape(1, -1)
        return jnp.pad(b, ((0, 0), (0, n_pad - b.shape[1])))

    return {
        # K of W1 unpadded (= in_size); N padded to lane-dense hidden.
        "w1": jnp.pad(w1, ((0, 0), (0, h1_pad - h1))),
        "b1": pad_b(params["layer1_b"], h1_pad),
        "w2": jnp.pad(w2, ((0, h1_pad - h1), (0, h2_pad - h2))),
        "b2": pad_b(params["layer2_b"], h2_pad),
        # N of Wmu unpadded (= output_size): mu is written at its true width.
        "wmu": jnp.pad(wmu, ((0, h2_pad - h2), (0, 0))),
        "bmu": pad_b(params["mu_b"], out_size),
        "sigma": jnp.asarray(params["sigma"], jnp.float32),
    }


def _batch_tiling(batch):
    """Pick (tile, padded_batch, n_blocks) with minimal batch slack.

    Batch is padded only to a sublane-aligned multiple of the tile; whenever
    there is more than one sublane-tile of rows we force >= 2 grid blocks so
    the "parallel" grid axis can feed both v7x TensorCores.
    """
    b8 = _round_up(batch, SUBLANE)
    n_blocks = max(pl.cdiv(b8, MAX_BATCH_TILE), 2 if b8 > SUBLANE else 1)
    tb = _round_up(pl.cdiv(b8, n_blocks), SUBLANE)
    return tb, tb * n_blocks, n_blocks


def normal_mlp_policy_forward(x, kparams, *, output_size):
    """Fused MLP policy forward.

    Returns (mu, scale): mu is (batch, output_size), scale is (output_size,),
    exactly what Independent(Normal(mu, scale), 1) needs.
    """
    x = jnp.asarray(x, jnp.float32)
    B, in_size = x.shape

    # Batch-independent head: exp(clamp(sigma)) computed outside the kernel
    # (8 elements; keeping it in the kernel would re-store it every grid step).
    scale = jnp.exp(jnp.maximum(kparams["sigma"], MIN_LOG_STD))
    if B == 0:
        return jnp.zeros((0, output_size), jnp.float32), scale

    h1_pad = kparams["w1"].shape[1]
    h2_pad = kparams["w2"].shape[1]

    tb, b_pad, n_blocks = _batch_tiling(B)
    # Only the batch dim is (minimally) padded; feature/output dims unpadded.
    x_in = x if b_pad == B else jnp.pad(x, ((0, b_pad - B), (0, 0)))

    def resident(shape):
        # Constant index_map: weights/biases stay VMEM-resident across grid.
        return pl.BlockSpec(shape, lambda i: (0, 0))

    cost = pl.CostEstimate(
        flops=2 * b_pad * (in_size * h1_pad + h1_pad * h2_pad
                           + h2_pad * output_size),
        bytes_accessed=4 * (b_pad * in_size + b_pad * output_size
                            + in_size * h1_pad + h1_pad * h2_pad
                            + h2_pad * output_size
                            + h1_pad + h2_pad + output_size),
        transcendentals=0,
    )

    mu_out = pl.pallas_call(
        _mlp_kernel,
        out_shape=jax.ShapeDtypeStruct((b_pad, output_size), jnp.float32),
        grid=(n_blocks,),
        in_specs=[
            # x: batch-tiled, last dim == full array dim (no lane padding).
            pl.BlockSpec((tb, in_size), lambda i: (i, 0)),
            resident((in_size, h1_pad)),
            resident((1, h1_pad)),
            resident((h1_pad, h2_pad)),
            resident((1, h2_pad)),
            resident((h2_pad, output_size)),
            resident((1, output_size)),
        ],
        # mu: batch-tiled, last dim == full array dim (true output width).
        out_specs=pl.BlockSpec((tb, output_size), lambda i: (i, 0)),
        compiler_params=pltpu.CompilerParams(
            dimension_semantics=("parallel",),   # v7x: 2 TCs split the batch
            # Fits easily on every generation (v7x: 64 MiB physical / 32 MiB
            # scoped per TC); working set at tb=1024 is ~1.5 MiB.
            vmem_limit_bytes=32 * 1024 * 1024,
        ),
        cost_estimate=cost,
    )(x_in, kparams["w1"], kparams["b1"], kparams["w2"], kparams["b2"],
      kparams["wmu"], kparams["bmu"])

    mu = mu_out if b_pad == B else mu_out[:B]
    return mu, scale


# ----------------------------------------------------------------------------
# Parameter init matching the torch module (xavier_uniform weights, zero bias,
# sigma filled with log(init_std)), stored in torch layout (out, in).
# ----------------------------------------------------------------------------
def xavier_uniform(key, out_features, in_features):
    bound = np.sqrt(6.0 / (in_features + out_features))
    return jax.random.uniform(
        key, (out_features, in_features), dtype=jnp.float32,
        minval=-bound, maxval=bound)


def init_params(key, input_size, output_size, hidden_sizes):
    layer_sizes = (input_size,) + hidden_sizes
    keys = jax.random.split(key, len(hidden_sizes) + 1)
    params = {}
    for i in range(1, len(hidden_sizes) + 1):
        params[f"layer{i}_w"] = xavier_uniform(
            keys[i - 1], layer_sizes[i], layer_sizes[i - 1])
        params[f"layer{i}_b"] = jnp.zeros((layer_sizes[i],), jnp.float32)
    params["mu_w"] = xavier_uniform(keys[-1], output_size, layer_sizes[-1])
    params["mu_b"] = jnp.zeros((output_size,), jnp.float32)
    params["sigma"] = jnp.full((output_size,), float(np.log(INIT_STD)),
                               jnp.float32)
    return params


if __name__ == "__main__":
    INPUT_SIZE = 16
    OUTPUT_SIZE = 8
    HIDDEN_SIZES = (32, 32)

    key = jax.random.PRNGKey(0)
    pkey, xkey = jax.random.split(key)
    params = init_params(pkey, INPUT_SIZE, OUTPUT_SIZE, HIDDEN_SIZES)

    # One-time layout prep (transpose + hidden-dim pad), hoisted out of the
    # forward path.
    kparams = prepare_kernel_params(params)

    forward = jax.jit(functools.partial(normal_mlp_policy_forward,
                                        output_size=OUTPUT_SIZE))

    # Batch 16 exercises the 2-block parallel grid; batch 13 exercises the
    # (minimal) batch-tail padding + slice path.
    for batch in (16, 13):
        x = jax.random.normal(jax.random.fold_in(xkey, batch),
                              (batch, INPUT_SIZE), dtype=jnp.float32)
        mu, scale = forward(x, kparams)
        jax.block_until_ready((mu, scale))

        # Sanity check against a pure-JAX reference of the torch math.
        h = jnp.maximum(x @ params["layer1_w"].T + params["layer1_b"], 0.0)
        h = jnp.maximum(h @ params["layer2_w"].T + params["layer2_b"], 0.0)
        mu_ref = h @ params["mu_w"].T + params["mu_b"]
        scale_ref = jnp.exp(jnp.maximum(params["sigma"], MIN_LOG_STD))
        assert mu.shape == (batch, OUTPUT_SIZE)
        assert scale.shape == (OUTPUT_SIZE,)
        np.testing.assert_allclose(np.asarray(mu), np.asarray(mu_ref),
                                   rtol=1e-5, atol=1e-5)
        np.testing.assert_allclose(np.asarray(scale), np.asarray(scale_ref),
                                   rtol=1e-6, atol=1e-6)

    print("KERNEL_OK")
</pallas_src>

<mosaic_0001>
module attributes {stable_mosaic.version = 11 : i64} {
  func.func @_mlp_kernel(%arg0: i32, %arg1: memref<8x16xf32, #tpu.memory_space<vmem>>, %arg2: memref<16x128xf32, #tpu.memory_space<vmem>>, %arg3: memref<1x128xf32, #tpu.memory_space<vmem>>, %arg4: memref<128x128xf32, #tpu.memory_space<vmem>>, %arg5: memref<1x128xf32, #tpu.memory_space<vmem>>, %arg6: memref<128x8xf32, #tpu.memory_space<vmem>>, %arg7: memref<1x8xf32, #tpu.memory_space<vmem>>, %arg8: memref<8x8xf32, #tpu.memory_space<vmem>>) attributes {dimension_semantics = [#tpu.dimension_semantics<parallel>], iteration_bounds = array<i64: 2>, scalar_prefetch = 0 : i64, scratch_operands = 0 : i64, tpu.core_type = #tpu.core_type<tc>, window_params = [{transform_indices = @transform_0, window_bounds = array<i64: 8, 16>}, {pipeline_mode = #tpu.pipeline_mode<synchronous>, transform_indices = @transform_1, window_bounds = array<i64: 16, 128>}, {pipeline_mode = #tpu.pipeline_mode<synchronous>, transform_indices = @transform_2, window_bounds = array<i64: 1, 128>}, {pipeline_mode = #tpu.pipeline_mode<synchronous>, transform_indices = @transform_3, window_bounds = array<i64: 128, 128>}, {pipeline_mode = #tpu.pipeline_mode<synchronous>, transform_indices = @transform_4, window_bounds = array<i64: 1, 128>}, {pipeline_mode = #tpu.pipeline_mode<synchronous>, transform_indices = @transform_5, window_bounds = array<i64: 128, 8>}, {pipeline_mode = #tpu.pipeline_mode<synchronous>, transform_indices = @transform_6, window_bounds = array<i64: 1, 8>}, {transform_indices = @transform_7, window_bounds = array<i64: 8, 8>}]} {
    %c0 = arith.constant 0 : index
    %c0_0 = arith.constant 0 : index
    %0 = vector.load %arg1[%c0, %c0_0] : memref<8x16xf32, #tpu.memory_space<vmem>>, vector<8x16xf32>
    %c0_1 = arith.constant 0 : index
    %c0_2 = arith.constant 0 : index
    %1 = vector.load %arg2[%c0_1, %c0_2] : memref<16x128xf32, #tpu.memory_space<vmem>>, vector<16x128xf32>
    %cst = arith.constant dense<0.000000e+00> : vector<8x128xf32>
    %2 = tpu.matmul %0, %1, %cst {dimension_numbers = #tpu.dot_dimension_numbers<[1], [0], [0], [1], [0, 0, 1, 1], [], []>} : vector<8x16xf32>, vector<16x128xf32>, vector<8x128xf32> -> vector<8x128xf32>
    %c0_3 = arith.constant 0 : index
    %c0_4 = arith.constant 0 : index
    %3 = vector.load %arg3[%c0_3, %c0_4] : memref<1x128xf32, #tpu.memory_space<vmem>>, vector<1x128xf32>
    %4 = vector.broadcast %3 : vector<1x128xf32> to vector<8x128xf32>
    %5 = arith.addf %2, %4 : vector<8x128xf32>
    %cst_5 = arith.constant 0.000000e+00 : f32
    %6 = vector.broadcast %cst_5 : f32 to vector<8x128xf32>
    %7 = arith.maximumf %5, %6 : vector<8x128xf32>
    %c0_6 = arith.constant 0 : index
    %c0_7 = arith.constant 0 : index
    %8 = vector.load %arg4[%c0_6, %c0_7] : memref<128x128xf32, #tpu.memory_space<vmem>>, vector<128x128xf32>
    %cst_8 = arith.constant dense<0.000000e+00> : vector<8x128xf32>
    %9 = tpu.matmul %7, %8, %cst_8 {dimension_numbers = #tpu.dot_dimension_numbers<[1], [0], [0], [1], [0, 0, 1, 1], [], []>} : vector<8x128xf32>, vector<128x128xf32>, vector<8x128xf32> -> vector<8x128xf32>
    %c0_9 = arith.constant 0 : index
    %c0_10 = arith.constant 0 : index
    %10 = vector.load %arg5[%c0_9, %c0_10] : memref<1x128xf32, #tpu.memory_space<vmem>>, vector<1x128xf32>
    %11 = vector.broadcast %10 : vector<1x128xf32> to vector<8x128xf32>
    %12 = arith.addf %9, %11 : vector<8x128xf32>
    %cst_11 = arith.constant 0.000000e+00 : f32
    %13 = vector.broadcast %cst_11 : f32 to vector<8x128xf32>
    %14 = arith.maximumf %12, %13 : vector<8x128xf32>
    %c0_12 = arith.constant 0 : index
    %c0_13 = arith.constant 0 : index
    %15 = vector.load %arg6[%c0_12, %c0_13] : memref<128x8xf32, #tpu.memory_space<vmem>>, vector<128x8xf32>
    %cst_14 = arith.constant dense<0.000000e+00> : vector<8x8xf32>
    %16 = tpu.matmul %14, %15, %cst_14 {dimension_numbers = #tpu.dot_dimension_numbers<[1], [0], [0], [1], [0, 0, 1, 1], [], []>} : vector<8x128xf32>, vector<128x8xf32>, vector<8x8xf32> -> vector<8x8xf32>
    %c0_15 = arith.constant 0 : index
    %c0_16 = arith.constant 0 : index
    %17 = vector.load %arg7[%c0_15, %c0_16] : memref<1x8xf32, #tpu.memory_space<vmem>>, vector<1x8xf32>
    %18 = vector.broadcast %17 : vector<1x8xf32> to vector<8x8xf32>
    %19 = arith.addf %16, %18 : vector<8x8xf32>
    %c0_17 = arith.constant 0 : index
    %c0_18 = arith.constant 0 : index
    %20 = vector.load %arg8[%c0_17, %c0_18] : memref<8x8xf32, #tpu.memory_space<vmem>>, vector<8x8xf32>
    tpu.vector_store %arg8[%c0_17, %c0_18], %19 {strides = array<i32>} : memref<8x8xf32, #tpu.memory_space<vmem>>, vector<8x8xf32>,
    return
  }
  func.func @transform_0(%arg0: i32) -> (i32, i32) {
    %c0_i32 = arith.constant 0 : i32
    %c0_i32_0 = arith.constant 0 : i32
    return %arg0, %c0_i32 : i32, i32
  }
  func.func @transform_1(%arg0: i32) -> (i32, i32) {
    %c0_i32 = arith.constant 0 : i32
    %c0_i32_0 = arith.constant 0 : i32
    %c0_i32_1 = arith.constant 0 : i32
    return %c0_i32, %c0_i32_0 : i32, i32
  }
  func.func @transform_2(%arg0: i32) -> (i32, i32) {
    %c0_i32 = arith.constant 0 : i32
    %c0_i32_0 = arith.constant 0 : i32
    %c0_i32_1 = arith.constant 0 : i32
    return %c0_i32, %c0_i32_0 : i32, i32
  }
  func.func @transform_3(%arg0: i32) -> (i32, i32) {
    %c0_i32 = arith.constant 0 : i32
    %c0_i32_0 = arith.constant 0 : i32
    %c0_i32_1 = arith.constant 0 : i32
    return %c0_i32, %c0_i32_0 : i32, i32
  }
  func.func @transform_4(%arg0: i32) -> (i32, i32) {
    %c0_i32 = arith.constant 0 : i32
    %c0_i32_0 = arith.constant 0 : i32
    %c0_i32_1 = arith.constant 0 : i32
    return %c0_i32, %c0_i32_0 : i32, i32
  }
  func.func @transform_5(%arg0: i32) -> (i32, i32) {
    %c0_i32 = arith.constant 0 : i32
    %c0_i32_0 = arith.constant 0 : i32
    %c0_i32_1 = arith.constant 0 : i32
    return %c0_i32, %c0_i32_0 : i32, i32
  }
  func.func @transform_6(%arg0: i32) -> (i32, i32) {
    %c0_i32 = arith.constant 0 : i32
    %c0_i32_0 = arith.constant 0 : i32
    %c0_i32_1 = arith.constant 0 : i32
    return %c0_i32, %c0_i32_0 : i32, i32
  }
  func.func @transform_7(%arg0: i32) -> (i32, i32) {
    %c0_i32 = arith.constant 0 : i32
    %c0_i32_0 = arith.constant 0 : i32
    return %arg0, %c0_i32 : i32, i32
  }
}

</mosaic_0001>

<bundles_post_ra>
// kernel: normal_mlp_policy_forward.1
= control target key start
LH: loop header
LB: loop body
LE: loop exit
PB: predicated region body
PF: predicated region fallthrough
CT: control target
= control target key end

     0   :  { %12 = vsyncpa [#allocation3], 0  ;;  %s922_s0 = inlined_call_operand.hbm [shape: f32[16,16], index: 0, kind: input, shape index: {}]   ;;  %s923_s1 = inlined_call_operand.hbm [shape: f32[16,128], index: 1, kind: input, shape index: {}]   ;;  %s924_s2 = inlined_call_operand.vmem [shape: f32[1,128], index: 2, kind: input, shape index: {}]   ;;  %s925_s3 = inlined_call_operand.vmem [shape: f32[128,128], index: 3, kind: input, shape index: {}]   ;;  %s926_s4 = inlined_call_operand.vmem [shape: f32[1,128], index: 4, kind: input, shape index: {}]   ;;  %s927_s5 = inlined_call_operand.vmem [shape: f32[128,8], index: 5, kind: input, shape index: {}]   ;;  %s928_s6 = inlined_call_operand.vmem [shape: f32[1,8], index: 6, kind: input, shape index: {}]   ;;  %s929_s7 = inlined_call_operand.vmem [shape: f32[16,8], index: 7, kind: output, shape index: {}]  }
   0x1   :  { %14 = vsyncpa [#allocation3 + $0x1], 0 }
   0x2   :  { %15 = vsyncpa [#allocation5], 0  ;;  %s714_s24 = smov 0   ;;  %s716_s25 = smov 0  }
   0x3   :  { %s718_s26 = smov 0   ;;  %s720_s27 = smov 0  }
   0x4 LB: > { %s215_s30 = sshll.u32 %s923_s1, 4  ;;  %s736_s8 = sadd.s32 4294967295, %s669_s27   ;;  %s669_s27 = sphi %s720_s27, %s936_s27   ;;  %s665_s26 = sphi %s718_s26, %s935_s26   ;;  %s661_s25 = sphi %s716_s25, %s934_s25   ;;  %s657_s24 = sphi %s714_s24, %s933_s24   ;;  %s216_s30 = int_to_ptr.hbm [resolvable:$true] %s215_s30 }
   0x5   : > { %p504_p0 = scmp.ge.s32.totalorder %s669_s27, 1  ;;  %p42_p1 = scmp.eq.s32.totalorder %s736_s8, 0 }
   0x6   : > { %p204_p2 = scmp.lt.s32.totalorder %s669_s27, 3  ;;  %s671_s10 = smov [#allocation4]  }
   0x7   : > { %s217_s11 = sshll.u32 %s671_s10, 4  ;;  %s672_s12 = smov 128   ;;  %s218_s11 = int_to_ptr.vmem [resolvable:$true] %s217_s11 }
   0x8   : > { %p741_p3 = pnand %p504_p0, %p204_p2  ;;  %s673_s13 = smov 8  }
   0x9   : > { %s750_s14 = sadd.s32 1, %s669_s27   ;;  %s28_s16 = sadd.s32 1, %s665_s26 }
   0xa   : > { %p522_p4 = pneg %p741_p3  ;;  %s25_s15 = ssub.s32 %s669_s27, %s750_s14 }
   0xb   : > { %p26_p6 = scmp.eq.s32.totalorder %s25_s15, 0  ;;  %p35_p7 = scmp.ne.s32.totalorder %s665_s26, %s661_s25 }
   0xc   : > { %p523_p5 = pnand %p522_p4, %p42_p1  ;;  %p36_p8 = scmp.eq.s32.totalorder %s669_s27, 0 }
   0xd   : > { %p41_p9 = scmp.ne.s32.totalorder %s661_s25, %s657_s24  ;;  %p531_p12 = scmp.lt.s32.totalorder %s669_s27, 2 }
   0xe   : > { %525 = dma.hbm_to_vmem [thread:$0]  (!%p523_p5), %s216_s30, 256, %s218_s11, [#allocation5], %s672_s12, %s672_s12, %s673_s13  }
   0xf   : > { %s760_s17 = scalar_select %p26_p6, %s665_s26, %s28_s16  }
  0x10   : > { %p37_p10 = por %p36_p8, %p35_p7  ;;  %p764_p11 = por %p42_p1, %p41_p9 }
  0x11   : > { %s246_s19 = sand.u32 1, %s665_s26   ;;  %s508_s21 = sshll.u32 %s669_s27, 3 }
  0x12   : > { %s507_s20 = sshll.u32 %s246_s19, 3  ;;  %s254_s28 = scalar_lea.hbm %s922_s0, %s508_s21 }
  0x13   : > { %s250_s29 = scalar_lea.vmem [#allocation2], %s507_s20  ;;  %s256_s10 = sshll.u32 %s254_s28, 4  ;;  %s257_s10 = int_to_ptr.hbm [resolvable:$true] %s256_s10 }
  0x14   : > { %s258_s30 = sshll.u32 %s250_s29, 4  ;;  %p774_p13 = pnand %p531_p12, %p37_p10  ;;  %s259_s30 = int_to_ptr.vmem [resolvable:$true] %s258_s30 }
  0x15   : > { %s247_s11 = scalar_lea.sflag [#allocation3], %s246_s19  ;;  %s601_s12 = sshra.s32 %s257_s10, 4  ;;  %s602_s12 = int_to_ptr.hbm [resolvable:$true] %s601_s12 }
  0x16   : > { %s603_s13 = scalar_lea.hbm %s602_s12, 8  ;;  %p605_p2 = pneg %p774_p13 }
  0x17   : > { %p604_p0 = scmp.ne.s32.totalorder %s602_s12, %s603_s13  ;;  %s608_s16 = scalar_lea.hbm %s922_s0, 16 }
  0x18   : > { %p609_p6 = scmp.lt.s32.totalorder %s602_s12, %s922_s0  ;;  %p610_p7 = scmp.lt.s32.totalorder %s608_s16, %s603_s13 }
  0x19   : > { %p606_p4 = pnand %p605_p2, %p604_p0 }
  0x1a   : > { %p611_p8 = por %p610_p7, %p609_p6 }
  0x1b   : > { %p607_p5 = pneg %p606_p4 }
  0x1d   : > { %p612_p9 = pnand %p611_p8, %p607_p5 }
  0x1f   : > { %615 = shalt.err (!%p612_p9)
}
  0x20   : > { %529 = dma.hbm_to_vmem [thread:$0]  (!%p774_p13), %s257_s10, 128, %s259_s30, %s247_s11  }
  0x21   : > { %267 = sbr.rel (%p741_p3) target bundleno = 440 (0x1b8), region = 48  ;;  %s269_s19 = sand.u32 (!%p741_p3), 1, %s661_s25  }
  0x22   : > { %s510_s22 = sshll.u32 (!%p741_p3), %s269_s19, 3  ;;  %s270_s23 = scalar_lea.sflag (!%p741_p3), [#allocation3], %s269_s19 }
  0x23   : > { %s273_s28 = scalar_lea.vmem (!%p741_p3), [#allocation2], %s510_s22 }
  0x26   : > { %648 = dma.done.wait (%p764_p11), %s270_s23, 128  }
  0x27   : > { %650 = vsyncadd (%p764_p11), %s270_s23, 4294967168 }
  0x28   : > { %652 = dma.done.wait (%p42_p1), [#allocation5], 256  }
  0x29   : > { %654 = vsyncadd (%p42_p1), [#allocation5], 4294967040  ;;  %v315_v0 = vld [vmem:[#allocation4 + $0x8] sm:$0xff]  ;;  %v314_v1 = vld [vmem:[#allocation4] sm:$0xff]  ;;  %vm320_vm0 = vcmask 130048   ;;  %p309_p1 = scmp.lt.s32.totalorder %s736_s8, 1 }
  0x2a   : > { %338 = vmatpush.msra.mxu0 %v315_v0  ;;  %v313_v2 = vld [vmem:[%s273_s28] sm:$0xff]  ;;  %v360_v3 = vld [vmem:[%s925_s3 + $0x78] sm:$0xff]  ;;  %v359_v4 = vld [vmem:[%s925_s3 + $0x70] sm:$0xff]  ;;  %vm426_vm1 = vcmask 64512  }
  0x2b   : > { %365 = vmatpush.msra.mxu1 %v360_v3  ;;  %v358_v5 = vld [vmem:[%s925_s3 + $0x68] sm:$0xff]  ;;  %v357_v6 = vld [vmem:[%s925_s3 + $0x60] sm:$0xff]  ;;  %v356_v7 = vld [vmem:[%s925_s3 + $0x58] sm:$0xff]  ;;  %s938_s8 = smov (!%p309_p1, %s736_s8), 1 }
  0x2c   : > { %339 = vmatpush.msra.mxu0 %v314_v1  ;;  %v355_v8 = vld [vmem:[%s925_s3 + $0x50] sm:$0xff]  ;;  %v354_v9 = vld [vmem:[%s925_s3 + $0x48] sm:$0xff]  ;;  %v353_v10 = vld [vmem:[%s925_s3 + $0x40] sm:$0xff]  ;;  %s512_s19 = sshll.u32 %s938_s8, 3 }
  0x2d   : > { %513 = vmatmul.msk.f32.vlgmr.msra.gmra.mxu0 %vm320_vm0, %v313_v2  ;;  %366 = vmatpush.msra.mxu1 %v359_v4  ;;  %v352_v11 = vld [vmem:[%s925_s3 + $0x38] sm:$0xff]  ;;  %v351_v12 = vld [vmem:[%s925_s3 + $0x30] sm:$0xff]  ;;  %v350_v13 = vld [vmem:[%s925_s3 + $0x28] sm:$0xff]  ;;  %s312_s29 = scalar_lea.vmem %s929_s7, %s512_s19 }
  0x2e   : > { %v349_v14 = vld [vmem:[%s925_s3 + $0x20] sm:$0xff]  ;;  %v348_v15 = vld [vmem:[%s925_s3 + $0x18] sm:$0xff]  ;;  %v347_v16 = vld [vmem:[%s925_s3 + $0x10] sm:$0xff] }
  0x2f   : > { %367 = vmatpush.msra.mxu1 %v358_v5  ;;  %v346_v17 = vld [vmem:[%s925_s3 + $0x8] sm:$0xff]  ;;  %v345_v18 = vld [vmem:[%s925_s3] sm:$0xff]  ;;  %v401_v19 = vld [vmem:[%s927_s5 + $0x78] sm:$0xff] }
  0x30   : > { %v400_v20 = vld [vmem:[%s927_s5 + $0x70] sm:$0xff]  ;;  %406 = vmatpush.msra.mxu2 %v401_v19  ;;  %v399_v21 = vld [vmem:[%s927_s5 + $0x68] sm:$0xff]  ;;  %v398_v22 = vld [vmem:[%s927_s5 + $0x60] sm:$0xff] }
  0x31   : > { %368 = vmatpush.msra.mxu1 %v357_v6  ;;  %v397_v23 = vld [vmem:[%s927_s5 + $0x58] sm:$0xff]  ;;  %v396_v24 = vld [vmem:[%s927_s5 + $0x50] sm:$0xff]  ;;  %v395_v25 = vld [vmem:[%s927_s5 + $0x48] sm:$0xff] }
  0x32   : > { %407 = vmatpush.msra.mxu2 %v400_v20  ;;  %v394_v26 = vld [vmem:[%s927_s5 + $0x40] sm:$0xff]  ;;  %v393_v27 = vld [vmem:[%s927_s5 + $0x38] sm:$0xff]  ;;  %v392_v28 = vld [vmem:[%s927_s5 + $0x30] sm:$0xff] }
  0x33   : > { %369 = vmatpush.msra.mxu1 %v356_v7  ;;  %v391_v29 = vld [vmem:[%s927_s5 + $0x28] sm:$0xff]  ;;  %v390_v30 = vld [vmem:[%s927_s5 + $0x20] sm:$0xff]  ;;  %v389_v31 = vld [vmem:[%s927_s5 + $0x18] sm:$0xff] }
  0x34   : > { %408 = vmatpush.msra.mxu2 %v399_v21  ;;  %v568_v32 = vld [vmem:[%s924_s2] ss:$0 sm:$0xff]  ;;  %v388_v36 = vld [vmem:[%s927_s5 + $0x10] sm:$0xff]  ;;  %v387_v37 = vld [vmem:[%s927_s5 + $0x8] sm:$0xff] }
  0x35   : > { %370 = vmatpush.msra.mxu1 %v355_v8  ;;  %v386_v38 = vld [vmem:[%s927_s5] sm:$0xff] }
  0x36   : > { %409 = vmatpush.msra.mxu2 %v398_v22  ;;  %v569_v39 = vld [vmem:[%s926_s4] ss:$0 sm:$0xff] }
  0x37   : > { %371 = vmatpush.msra.mxu1 %v354_v9  ;;  %v570_v43 = vld [vmem:[%s928_s6] ss:$0 sm:$0xff] }
  0x38   : > { %410 = vmatpush.msra.mxu2 %v397_v23 }
  0x39   : > { %372 = vmatpush.msra.mxu1 %v353_v10 }
  0x3a   : > { %411 = vmatpush.msra.mxu2 %v396_v24 }
  0x3b   : > { %373 = vmatpush.msra.mxu1 %v352_v11 }
  0x3c   : > { %412 = vmatpush.msra.mxu2 %v395_v25 }
  0x3d   : > { %374 = vmatpush.msra.mxu1 %v351_v12 }
  0x3e   : > { %413 = vmatpush.msra.mxu2 %v394_v26 }
  0x3f   : > { %375 = vmatpush.msra.mxu1 %v350_v13 }
  0x40   : > { %414 = vmatpush.msra.mxu2 %v393_v27 }
  0x41   : > { %376 = vmatpush.msra.mxu1 %v349_v14 }
  0x42   : > { %415 = vmatpush.msra.mxu2 %v392_v28 }
  0x43   : > { %377 = vmatpush.msra.mxu1 %v348_v15 }
  0x44   : > { %416 = vmatpush.msra.mxu2 %v391_v29 }
  0x45   : > { %378 = vmatpush.msra.mxu1 %v347_v16 }
  0x46   : > { %417 = vmatpush.msra.mxu2 %v390_v30 }
  0x47   : > { %379 = vmatpush.msra.mxu1 %v346_v17 }
  0x48   : > { %418 = vmatpush.msra.mxu2 %v389_v31 }
  0x49   : > { %380 = vmatpush.msra.mxu1 %v345_v18 }
  0x4a   : > { %419 = vmatpush.msra.mxu2 %v388_v36 }
  0x4c   : > { %420 = vmatpush.msra.mxu2 %v387_v37 }
  0x4e   : > { %421 = vmatpush.msra.mxu2 %v386_v38 }
  0xaa   : > { %v341_v33 = vpop.f32.mrf.mxu0 }
  0xab   : > { %v342_v34 = vadd.f32 %v568_v32, %v341_v33 }
  0xad   : > { %v344_v35 = vmax.f32 %v342_v34, 0.0 }
  0xaf   : > { %381 = vmatmul.f32.vlgmr.msra.gmra.mxu1 %v344_v35 }
 0x12c   : > { %v382_v40 = vpop.f32.mrf.mxu1 }
 0x12d   : > { %v383_v41 = vadd.f32 %v569_v39, %v382_v40 }
 0x12f   : > { %v385_v42 = vmax.f32 %v383_v41, 0.0 }
 0x131   : > { %422 = vmatmul.f32.vlgmr.msra.gmra.mxu2 %v385_v42 }
 0x1b4   : > { %v423_v44 = vpop.f32.mrf.mxu2 }
 0x1b5   : > { %v424_v45 = vadd.f32 %v570_v43, %v423_v44 }
 0x1b7   : > { %427 = vst.msk [vmem:[%s312_s29] sm:$0xff] %vm426_vm1, %v424_v45 }
 0x1b8 PF: > { %p18_p3 = scmp.ge.s32.totalorder %s750_s14, 4   ;;  %s933_s24 = smov %s661_s25 }
 0x1b9   : > { %s934_s25 = smov %s665_s26  ;;  %s935_s26 = smov %s760_s17 }
 0x1ba   : > { %s936_s27 = smov %s750_s14  ;;  %20 = sbr.rel (!%p18_p3) target bundleno = 4 (0x4), region = 92 }
 0x1bf   :  { %447 = vsyncpa [#allocation3], 1 }
 0x1c0   :  { %449 = vsyncpa [#allocation3 + $0x1], 1 }
 0x1c1   :  { %450 = vsyncpa [#allocation5], 1 }

</bundles_post_ra>
